<compile_context>
chip_gen: v7x
topology: tpu7x:2x2x1
jax: 0.10.0
libtpu: 0.0.40
codegen_flags: <defaults>
</compile_context>

<pallas_src>
import functools

import jax
import jax.numpy as jnp
from jax.experimental import pallas as pl
from jax.experimental.pallas import tpu as pltpu


def _infonce_kernel(z1_ref, z2_ref, out_ref, *, inv_temperature):
    # (Bblk, S, N) tiles kept in their native dtype: bf16 (or f32) feeds the
    # MXU directly; accumulation is already f32 via preferred_element_type.
    z1 = z1_ref[...]
    z1 = z1 * jnp.asarray(inv_temperature, z1.dtype)   # O(B*S*N) scale, in-kernel
    z2 = z2_ref[...]

    # logits[b, s, t] = <z1_scaled[b, s], z2[b, t]> — batched MXU matmul that
    # contracts the hidden axis of both operands in their stored layout
    # (no explicit transpose of z2).
    logits = jax.lax.dot_general(
        z1, z2,
        dimension_numbers=(((2,), (2,)), ((0,), (0,))),
        preferred_element_type=jnp.float32,
    )                                                   # (Bblk, S, T) f32

    # Cross-entropy over the s-axis (class axis) for every column t, label t.
    m = jnp.max(logits, axis=1, keepdims=True)                               # (Bblk, 1, T)
    lse = jnp.log(jnp.sum(jnp.exp(logits - m), axis=1, keepdims=True)) + m   # (Bblk, 1, T)
    lse = lse[:, 0, :]                                                       # (Bblk, T)

    # Diagonal logits[b, t, t] computed directly as a row-wise dot over N —
    # O(S*N) VPU work instead of two S x S int32 iota tiles + select.
    diag = jnp.sum(z1.astype(jnp.float32) * z2.astype(jnp.float32), axis=-1)  # (Bblk, S)

    # Per-(b, t) loss terms; the mean is taken in the JAX wrapper.
    out_ref[...] = lse - diag


def _pick_batch_block(B, S, N, itemsize, budget_bytes=32 * 1024 * 1024):
    """Largest batch block whose per-step VMEM footprint fits the budget.

    Keeps the (Bblk, S) output block sublane-friendly: Bblk is either the full
    batch or a multiple of 8, and always divides B.
    """
    candidates = [bb for bb in range(1, B + 1)
                  if B % bb == 0 and (bb == B or bb % 8 == 0)]

    def footprint(bb):
        inputs = 2 * 2 * bb * S * N * itemsize     # z1, z2 tiles, double-buffered
        logits = bb * S * S * 4                    # f32 logits tile
        out = 2 * bb * S * 4                       # f32 per-position output
        return inputs + logits + out

    fitting = [bb for bb in candidates if footprint(bb) <= budget_bytes]
    return max(fitting) if fitting else min(candidates)


def infonce_pallas(z1, z2, temperature: float = 1.0):
    B, S, N = z1.shape
    assert z2.shape == (B, S, N)

    bblk = _pick_batch_block(B, S, N, jnp.dtype(z1.dtype).itemsize)
    grid = (B // bblk,)

    kernel = functools.partial(_infonce_kernel, inv_temperature=1.0 / temperature)

    # TODO(synk): for very large S, T-tile the logits with an online
    # (flash-style) logsumexp so the full SxS tile is never materialized;
    # not needed at the block sizes chosen by _pick_batch_block.
    per_pos = pl.pallas_call(
        kernel,
        out_shape=jax.ShapeDtypeStruct((B, S), jnp.float32),
        grid_spec=pltpu.PrefetchScalarGridSpec(
            num_scalar_prefetch=0,
            grid=grid,
            in_specs=[
                pl.BlockSpec((bblk, S, N), lambda i: (i, 0, 0)),
                pl.BlockSpec((bblk, S, N), lambda i: (i, 0, 0)),
            ],
            out_specs=pl.BlockSpec((bblk, S), lambda i: (i, 0)),
        ),
        compiler_params=pltpu.CompilerParams(
            dimension_semantics=("parallel",),        # independent batch blocks
            vmem_limit_bytes=48 * 1024 * 1024,
        ),
    )(z1, z2)

    return jnp.mean(per_pos)


def infonce_ref(z1, z2, temperature: float = 1.0):
    # Pure-JAX reference mirroring torch.nn.functional.cross_entropy semantics.
    logits = jnp.einsum("bsn,btn->bst", z1, z2) / temperature          # (B, S, T)
    lse = jax.nn.logsumexp(logits, axis=1)                              # (B, T)
    diag = jnp.einsum("bss->bs", logits)                                # (B, S)
    return jnp.mean(lse - diag)


if __name__ == "__main__":
    B, S, N = 2, 8, 32
    temperature = 0.5

    key = jax.random.PRNGKey(0)
    k1, k2 = jax.random.split(key)
    z1 = jax.random.normal(k1, (B, S, N), dtype=jnp.float32)
    z2 = jax.random.normal(k2, (B, S, N), dtype=jnp.float32)

    loss = infonce_pallas(z1, z2, temperature)
    jax.block_until_ready(loss)

    ref = infonce_ref(z1, z2, temperature)
    assert jnp.allclose(loss, ref, rtol=1e-5, atol=1e-5), (loss, ref)

    print("KERNEL_OK")
</pallas_src>

<mosaic_0001>
module attributes {stable_mosaic.version = 11 : i64} {
  func.func @_infonce_kernel(%arg0: i32, %arg1: memref<2x8x32xf32, #tpu.memory_space<vmem>>, %arg2: memref<2x8x32xf32, #tpu.memory_space<vmem>>, %arg3: memref<2x8xf32, #tpu.memory_space<vmem>>) attributes {dimension_semantics = [#tpu.dimension_semantics<parallel>], iteration_bounds = array<i64: 1>, scalar_prefetch = 0 : i64, scratch_operands = 0 : i64, tpu.core_type = #tpu.core_type<tc>, window_params = [{transform_indices = @transform_0, window_bounds = array<i64: 2, 8, 32>}, {transform_indices = @transform_1, window_bounds = array<i64: 2, 8, 32>}, {transform_indices = @transform_2, window_bounds = array<i64: 2, 8>}]} {
    %c0 = arith.constant 0 : index
    %c0_0 = arith.constant 0 : index
    %c0_1 = arith.constant 0 : index
    %0 = vector.load %arg1[%c0, %c0_0, %c0_1] : memref<2x8x32xf32, #tpu.memory_space<vmem>>, vector<2x8x32xf32>
    %cst = arith.constant 2.000000e+00 : f32
    %1 = vector.broadcast %cst : f32 to vector<2x8x32xf32>
    %2 = arith.mulf %0, %1 : vector<2x8x32xf32>
    %c0_2 = arith.constant 0 : index
    %c0_3 = arith.constant 0 : index
    %c0_4 = arith.constant 0 : index
    %3 = vector.load %arg2[%c0_2, %c0_3, %c0_4] : memref<2x8x32xf32, #tpu.memory_space<vmem>>, vector<2x8x32xf32>
    %cst_5 = arith.constant dense<0.000000e+00> : vector<2x8x8xf32>
    %4 = tpu.matmul %2, %3, %cst_5 {dimension_numbers = #tpu.dot_dimension_numbers<[2], [2], [1], [1], [0, 0, 0, 1, 1, 1], [0], [0]>} : vector<2x8x32xf32>, vector<2x8x32xf32>, vector<2x8x8xf32> -> vector<2x8x8xf32>
    %cst_6 = arith.constant dense<0xFF800000> : vector<2x8xf32>
    %5 = vector.multi_reduction <maximumf>, %4, %cst_6 [1] : vector<2x8x8xf32> to vector<2x8xf32>
    %6 = vector.shape_cast %5 : vector<2x8xf32> to vector<2x1x8xf32>
    %7 = vector.broadcast %6 : vector<2x1x8xf32> to vector<2x8x8xf32>
    %8 = arith.subf %4, %7 : vector<2x8x8xf32>
    %9 = math.exp %8 : vector<2x8x8xf32>
    %cst_7 = arith.constant dense<0.000000e+00> : vector<2x8xf32>
    %10 = vector.multi_reduction <add>, %9, %cst_7 [1] : vector<2x8x8xf32> to vector<2x8xf32>
    %11 = vector.shape_cast %10 : vector<2x8xf32> to vector<2x1x8xf32>
    %12 = math.log %11 : vector<2x1x8xf32>
    %13 = arith.addf %12, %6 : vector<2x1x8xf32>
    %14 = vector.shape_cast %13 : vector<2x1x8xf32> to vector<2x8xf32>
    %15 = arith.mulf %2, %3 : vector<2x8x32xf32>
    %cst_8 = arith.constant dense<0.000000e+00> : vector<2x8xf32>
    %16 = vector.multi_reduction <add>, %15, %cst_8 [2] : vector<2x8x32xf32> to vector<2x8xf32>
    %17 = arith.subf %14, %16 : vector<2x8xf32>
    %c0_9 = arith.constant 0 : index
    %c0_10 = arith.constant 0 : index
    %18 = vector.load %arg3[%c0_9, %c0_10] : memref<2x8xf32, #tpu.memory_space<vmem>>, vector<2x8xf32>
    tpu.vector_store %arg3[%c0_9, %c0_10], %17 {strides = array<i32>} : memref<2x8xf32, #tpu.memory_space<vmem>>, vector<2x8xf32>,
    return
  }
  func.func @transform_0(%arg0: i32) -> (i32, i32, i32) {
    %c0_i32 = arith.constant 0 : i32
    %c0_i32_0 = arith.constant 0 : i32
    %c0_i32_1 = arith.constant 0 : i32
    return %arg0, %c0_i32, %c0_i32_0 : i32, i32, i32
  }
  func.func @transform_1(%arg0: i32) -> (i32, i32, i32) {
    %c0_i32 = arith.constant 0 : i32
    %c0_i32_0 = arith.constant 0 : i32
    %c0_i32_1 = arith.constant 0 : i32
    return %arg0, %c0_i32, %c0_i32_0 : i32, i32, i32
  }
  func.func @transform_2(%arg0: i32) -> (i32, i32) {
    %c0_i32 = arith.constant 0 : i32
    %c0_i32_0 = arith.constant 0 : i32
    return %arg0, %c0_i32 : i32, i32
  }
}

</mosaic_0001>

<bundles_post_ra>
// kernel: tpu_custom_call.1
= control target key start
LH: loop header
LB: loop body
LE: loop exit
PB: predicated region body
PF: predicated region fallthrough
CT: control target
= control target key end

     0   :  { %7 = vsyncpa [#allocation3], 0  ;;  %s455_s0 = inlined_call_operand.hbm [shape: f32[2,8,32], index: 0, kind: input, shape index: {}]   ;;  %s456_s1 = inlined_call_operand.hbm [shape: f32[2,8,32], index: 1, kind: input, shape index: {}]   ;;  %s457_s2 = inlined_call_operand.hbm [shape: f32[2,8], index: 2, kind: output, shape index: {}]  }
   0x1   :  { %8 = vsyncpa [#allocation6], 0 }
   0x2   :  { %9 = vsyncpa [#allocation4], 0  ;;  %s393_s9 = smov [#allocation2]   ;;  %s321_s13 = scalar_lea.hbm %s455_s0, 256 }
   0x3   :  { %s15_s10 = sshll.u32 %s393_s9, 4  ;;  %p322_p0 = scmp.ne.s32.totalorder %s455_s0, %s321_s13  ;;  %s16_s10 = int_to_ptr.vmem [resolvable:$true] %s15_s10 }
   0x4   :  { %p325_p1 = scmp.lt.u32.totalorder %s321_s13, %s455_s0 }
   0x6   :  { %p327_p2 = pnand %p325_p1, %p322_p0 }
   0x8   :  { %330 = shalt.err (!%p327_p2)
}
   0x9   :  { %s331_s18 = scalar_lea.vmem %s16_s10, 256  ;;  %p336_p4 = scmp.lt.s32.totalorder %s16_s10, %s16_s10 }
   0xa   :  { %p332_p3 = scmp.ne.s32.totalorder %s16_s10, %s331_s18  ;;  %p337_p5 = scmp.lt.s32.totalorder %s331_s18, %s331_s18 }
   0xc   :  { %p338_p6 = por %p337_p5, %p336_p4 }
   0xe   :  { %p339_p7 = pnand %p338_p6, %p332_p3 }
  0x10   :  { %342 = shalt.err (!%p339_p7)
}
  0x11   :  { %s394_s19 = smov 128   ;;  %s395_s20 = smov 8  }
  0x12   :  { %21 = dma.hbm_to_vmem [thread:$0]  %s455_s0, 256, %s16_s10, [#allocation3], %s394_s19, %s394_s19, %s395_s20  }
  0x13   :  { %s396_s23 = smov [#allocation5]   ;;  %s343_s27 = scalar_lea.hbm %s456_s1, 256 }
  0x14   :  { %s27_s24 = sshll.u32 %s396_s23, 4  ;;  %p344_p8 = scmp.ne.s32.totalorder %s456_s1, %s343_s27  ;;  %s28_s24 = int_to_ptr.vmem [resolvable:$true] %s27_s24 }
  0x15   :  { %p347_p9 = scmp.lt.u32.totalorder %s343_s27, %s456_s1 }
  0x17   :  { %p349_p10 = pnand %p347_p9, %p344_p8 }
  0x19   :  { %352 = shalt.err (!%p349_p10)
}
  0x1a   :  { %s353_s4 = scalar_lea.vmem %s28_s24, 256  ;;  %p358_p12 = scmp.lt.s32.totalorder %s28_s24, %s28_s24 }
  0x1b   :  { %p354_p11 = scmp.ne.s32.totalorder %s28_s24, %s353_s4  ;;  %p359_p13 = scmp.lt.s32.totalorder %s353_s4, %s353_s4 }
  0x1d   :  { %p360_p0 = por %p359_p13, %p358_p12 }
  0x1f   :  { %p361_p1 = pnand %p360_p0, %p354_p11 }
  0x21   :  { %364 = shalt.err (!%p361_p1)
}
  0x22   :  { %33 = dma.hbm_to_vmem [thread:$0]  %s456_s1, 256, %s28_s24, [#allocation6], %s394_s19, %s394_s19, %s395_s20  }
  0x23   :  { %387 = dma.done.wait [#allocation3], 256  }
  0x24   :  { %388 = vsyncadd [#allocation3], 4294967040 }
  0x25   :  { %389 = dma.done.wait [#allocation6], 256  }
  0x26   :  { %390 = vsyncadd [#allocation6], 4294967040  ;;  %v397_v0 = vmov 0.0   ;;  %vm398_vm0 = vmmov 0   ;;  %vm46_vm1 = vcmask 261120   ;;  %v44_v1 = vld [vmem:[#allocation5] sm:$0xff]  ;;  %v250_v49 = vlaneseq }
  0x27   :  { %296 = vmatprep.subr.mxu0 %v397_v0  ;;  %301 = vmatprep.subr.mxu1 %v397_v0  ;;  %v45_v2 = vld [vmem:[#allocation5 + $0x8] sm:$0xff]  ;;  %v40_v3 = vld [vmem:[#allocation2] sm:$0xff]  ;;  %v41_v5 = vld [vmem:[#allocation2 + $0x8] sm:$0xff]  ;;  %vm199_vm2 = vcmask 64512   ;;  %s399_s1 = smov [#allocation7]   ;;  %vm267_vm3 = vcmask 1041409  }
  0x28   :  { %298 = vmatprep.mubr.msk.f32.mxu0 %vm398_vm0, %v397_v0  ;;  %303 = vmatprep.mubr.msk.f32.mxu1 %vm398_vm0, %v397_v0  ;;  %v42_v4 = vmul.f32 2.0, %v40_v3  ;;  %v43_v6 = vmul.f32 2.0, %v41_v5  ;;  %v251_v51 = vand.u32 127, %v250_v49  ;;  %v253_v52 = vshrl.u32 %v250_v49, 7  ;;  %s278_s6 = sshll.u32 %s399_s1, 4  ;;  %s279_s6 = int_to_ptr.vmem [resolvable:$true] %s278_s6 }
  0x29   :  { %297 = vmatpush3.xpose.msk.msra.mxu0 %vm46_vm1, %v44_v1  ;;  %302 = vmatpush3.xpose.msk.msra.mxu1 %vm46_vm1, %v45_v2  ;;  %vm270_vm4 = vcmask 58368   ;;  %s365_s7 = scalar_lea.vmem %s279_s6, 32  ;;  %p370_p3 = scmp.lt.s32.totalorder %s279_s6, %s279_s6 }
  0x2a   :  { %v241_v7 = vmul.f32 %v45_v2, %v43_v6  ;;  %v240_v8 = vmul.f32 %v44_v1, %v42_v4  ;;  %v254_v54 = vsub.s32 %v251_v51, %v253_v52  ;;  %p366_p2 = scmp.ne.s32.totalorder %s279_s6, %s365_s7  ;;  %p371_p4 = scmp.lt.s32.totalorder %s365_s7, %s365_s7 }
  0x2c   :  { %299 = vmatmul.mubr.msk.f32.vlgmr.msra.gmra.mrb[0].mxu0 %vm46_vm1, %v42_v4  ;;  %304 = vmatmul.mubr.msk.f32.vlgmr.msra.gmra.mrb[0].mxu1 %vm46_vm1, %v43_v6  ;;  %v245_v9 = vsel %vm46_vm1, %v241_v7, 0.0  ;;  %v242_v10 = vsel %vm46_vm1, %v240_v8, 0.0  ;;  %p372_p5 = por %p371_p4, %p370_p3 }
  0x2d   :  { %246 = vadd.xlane.f32.xlu0 %v245_v9 }
  0x2e   :  { %p373_p6 = pnand %p372_p5, %p366_p2 }
  0x31   :  { %243 = vadd.xlane.f32.xlu0 %v242_v10 }
  0xba   :  { %v247_v50 = vpop.xlane.xlu0 %246 }
  0xbb   :  { %v259_v60 = vrot.slane %v247_v50, %v254_v54 }
  0xbe   :  { %v244_v56 = vpop.xlane.xlu0 %243 }
  0xbf   :  { %v255_v62 = vrot.slane %v244_v56, %v254_v54 }
  0xff   :  { %v119_v11 = vpop.f32.mrb[0].mxu0  ;;  %v195_v12 = vpop.f32.mrb[0].mxu1 }
 0x100   :  { %v200_v13 = vsel %vm199_vm2, %v119_v11, -inf  ;;  %v207_v14 = vsel %vm199_vm2, %v195_v12, -inf  ;;  %v305_v15 = vpop.f32.mrb[1].mxu1  ;;  %v300_v16 = vpop.f32.mrb[1].mxu0 }
 0x101   :  { %v201_v17 = vrot.slane %v200_v13, 4  ;;  %v208_v18 = vrot.slane %v207_v14, 4 }
 0x103   :  { %v202_v19 = vmax.f32 %v200_v13, %v201_v17  ;;  %v209_v20 = vmax.f32 %v207_v14, %v208_v18 }
 0x105   :  { %v203_v21 = vrot.slane %v202_v19, 2  ;;  %v210_v22 = vrot.slane %v209_v20, 2 }
 0x107   :  { %v204_v23 = vmax.f32 %v202_v19, %v203_v21  ;;  %v211_v24 = vmax.f32 %v209_v20, %v210_v22 }
 0x109   :  { %v205_v25 = vrot.slane %v204_v23, 1  ;;  %v212_v26 = vrot.slane %v211_v24, 1 }
 0x10b   :  { %v206_v27 = vmax.f32 %v204_v23, %v205_v25  ;;  %v213_v28 = vmax.f32 %v211_v24, %v212_v26 }
 0x10d   :  { %v214_v29 = vsub.f32 %v119_v11, %v206_v27  ;;  %v215_v30 = vsub.f32 %v195_v12, %v213_v28 }
 0x10f   :  { %v216_v31 = vmul.f32 1.442695, %v214_v29  ;;  %v218_v32 = vmul.f32 1.442695, %v215_v30 }
 0x111   :  { %313 = vpow2.f32 %v216_v31 }
 0x112   :  { %315 = vpow2.f32 %v218_v32 }
 0x11b   :  { %v314_v33 = vpop.eup %313 }
 0x11c   :  { %v316_v34 = vpop.eup %315  ;;  %v220_v35 = vsel %vm199_vm2, %v314_v33, 0.0 }
 0x11d   :  { %v221_v36 = vrot.slane %v220_v35, 4  ;;  %v227_v37 = vsel %vm199_vm2, %v316_v34, 0.0 }
 0x11e   :  { %v228_v38 = vrot.slane %v227_v37, 4 }
 0x11f   :  { %v222_v39 = vadd.f32 %v221_v36, %v220_v35 }
 0x120   :  { %v229_v40 = vadd.f32 %v228_v38, %v227_v37 }
 0x121   :  { %v223_v41 = vrot.slane %v222_v39, 2 }
 0x122   :  { %v230_v42 = vrot.slane %v229_v40, 2 }
 0x123   :  { %v224_v43 = vadd.f32 %v223_v41, %v222_v39 }
 0x124   :  { %v231_v44 = vadd.f32 %v230_v42, %v229_v40 }
 0x125   :  { %v225_v45 = vrot.slane %v224_v43, 1 }
 0x126   :  { %v232_v46 = vrot.slane %v231_v44, 1 }
 0x127   :  { %v226_v47 = vadd.f32 %v225_v45, %v224_v43 }
 0x128   :  { %v233_v48 = vadd.f32 %v232_v46, %v231_v44 }
 0x129   :  { %317 = vlog2.f32 %v226_v47 }
 0x12a   :  { %319 = vlog2.f32 %v233_v48 }
 0x133   :  { %v318_v53 = vpop.eup %317 }
 0x134   :  { %v320_v55 = vpop.eup %319  ;;  %v235_v57 = vmul.f32 0.6931472, %v318_v53 }
 0x135   :  { %v237_v58 = vmul.f32 0.6931472, %v320_v55 }
 0x136   :  { %v238_v61 = vadd.f32 %v235_v57, %v206_v27 }
 0x137   :  { %v239_v59 = vadd.f32 %v237_v58, %v213_v28 }
 0x138   :  { %v262_v1 = vsub.f32 %v238_v61, %v255_v62 }
 0x139   :  { %v263_v63 = vsub.f32 %v239_v59, %v259_v60 }
 0x13b   :  { %v266_v0 = vrot.slane %v263_v63, 7 }
 0x13d   :  { %v268_v2 = vsel %vm267_vm3, %v266_v0, %v262_v1 }
 0x13e   :  { %271 = vst.msk [vmem:[#allocation7] sm:$0x3] %vm270_vm4, %v268_v2 }
 0x13f   :  { %376 = shalt.err (!%p373_p6)
}
 0x140   :  { %s377_s10 = scalar_lea.hbm %s457_s2, 32 }
 0x141   :  { %p378_p7 = scmp.ne.s32.totalorder %s457_s2, %s377_s10  ;;  %p381_p8 = scmp.lt.u32.totalorder %s377_s10, %s457_s2 }
 0x143   :  { %p383_p9 = pnand %p381_p8, %p378_p7 }
 0x145   :  { %386 = shalt.err (!%p383_p9)
}
 0x146   :  { %281 = dma.vmem_to_hbm [thread:$0]  %s279_s6, 32, %s457_s2, [#allocation4]  }
 0x147   :  { %391 = dma.done.wait [#allocation4], 32  }
 0x148   :  { %392 = vsyncadd [#allocation4], 4294967264 }
 0x149   :  { %285 = vsyncpa [#allocation3], 1 }
 0x14a   :  { %286 = vsyncpa [#allocation6], 1 }
 0x14b   :  { %287 = vsyncpa [#allocation4], 1 }

</bundles_post_ra>
